<compile_context>
chip_gen: v7x
topology: tpu7x:2x2x1
jax: 0.10.0
libtpu: 0.0.40
codegen_flags: <defaults>
</compile_context>

<pallas_src>
import functools

import jax
import jax.numpy as jnp
from jax import lax
from jax.experimental import pallas as pl
from jax.experimental.pallas import tpu as pltpu

EPS = 1e-5
RB = 16   # planes (sublanes) per inner-loop chunk; multiple of 16 so bf16
          # blocks slice on packed-tile boundaries


def _repvggdw_kernel(x_ref, w_ref, m_ref, o_ref, *, W, HWP):
    # x_ref : (CB, HWP)  flattened input planes (io dtype: f32 or bf16)
    # w_ref : (CB, 10)   f32: 9 effective 3x3 taps (t = ky*3 + kx) + fused bias
    # m_ref : (4, HWP)   f32 border masks: [row!=0, row!=H-1, col!=0, col!=W-1]
    # o_ref : (CB, HWP)
    mask_top = m_ref[0:1, :]
    mask_bot = m_ref[1:2, :]
    mask_l = m_ref[2:3, :]
    mask_r = m_ref[3:4, :]

    sh_up = W % HWP            # brings x[p - W] to position p
    sh_dn = (HWP - W) % HWP    # brings x[p + W] to position p
    sh_l = 1 % HWP             # brings A[p - 1] to position p
    sh_r = (HWP - 1) % HWP     # brings A[p + 1] to position p

    nchunks = x_ref.shape[0] // RB

    def chunk(i, carry):
        r0 = pl.multiple_of(i * RB, RB)
        xv = x_ref[pl.ds(r0, RB), :].astype(jnp.float32)     # (RB, HWP)
        wv = w_ref[pl.ds(r0, RB), :]                          # (RB, 10)

        # Vertical neighbours: each sublane row is one whole flattened plane,
        # so a lane rotation never mixes planes; the rows that wrap around are
        # exactly the ones zeroed by the top/bottom masks.
        v_up = pltpu.roll(xv, sh_up, axis=1) * mask_top       # in[y-1, x]
        v_dn = pltpu.roll(xv, sh_dn, axis=1) * mask_bot       # in[y+1, x]

        # Per-output-column weighted sums (kx = 0 / 1 / 2); 9 MACs total.
        left = wv[:, 0:1] * v_up + wv[:, 3:4] * xv + wv[:, 6:7] * v_dn
        cen = wv[:, 1:2] * v_up + wv[:, 4:5] * xv + wv[:, 7:8] * v_dn
        right = wv[:, 2:3] * v_up + wv[:, 5:6] * xv + wv[:, 8:9] * v_dn

        out = (cen + wv[:, 9:10]
               + mask_l * pltpu.roll(left, sh_l, axis=1)      # x-1 column
               + mask_r * pltpu.roll(right, sh_r, axis=1))    # x+1 column
        o_ref[pl.ds(r0, RB), :] = out.astype(o_ref.dtype)
        return carry

    lax.fori_loop(0, nchunks, chunk, 0, unroll=False)


def _plane_block(num_planes, hwp, in_itemsize):
    """Planes per grid step: ~512 KiB of input per step (amortises the
    per-step pipeline overhead), a multiple of RB, and >= ~8 grid steps when
    there are enough planes (megacore / 2-TC balance, pipeline depth)."""
    target = 512 * 1024
    cb = max(RB, target // (hwp * in_itemsize) // RB * RB)
    if num_planes >= 8 * RB:
        cb = min(cb, max(RB, (num_planes // 8) // RB * RB))
    return int(min(cb, pl.cdiv(num_planes, RB) * RB))


def repvggdw_forward(x_nchw, params, *, io_dtype=None):
    """RepVGGDW forward. x_nchw: (N, C, H, W). Returns (N, C, H, W).

    io_dtype: dtype of the streamed input planes (e.g. jnp.bfloat16 to halve
    input HBM bytes). Accumulation is always f32; output keeps x_nchw.dtype.
    """
    N, C, H, W = x_nchw.shape
    HW = H * W
    HWP = pl.cdiv(HW, 128) * 128          # lane-dense (128-multiple) spatial axis
    io_dtype = x_nchw.dtype if io_dtype is None else jnp.dtype(io_dtype)

    # ---- fold BN1, BN2, the depthwise 1x1 conv and the identity branch into a
    #      single effective depthwise 3x3 weight + per-channel bias (f32).
    s1 = params["bn1_gamma"] / jnp.sqrt(params["bn1_var"] + EPS)
    b1 = params["bn1_beta"] - params["bn1_mean"] * s1
    s2 = params["bn2_gamma"] / jnp.sqrt(params["bn2_var"] + EPS)
    b2 = params["bn2_beta"] - params["bn2_mean"] * s2

    w3 = params["w3"][:, 0, :, :].astype(jnp.float32)            # (C, 3, 3)
    w_eff = w3 * (s1 * s2)[:, None, None]
    w_eff = w_eff.at[:, 1, 1].add(s2 * (params["w1"] + 1.0))     # 1x1 + identity
    b_eff = s2 * (b1 + params["b1"]) + b2

    # per-plane (n, c) weight table: 9 taps + bias  -> (N*C, 10)
    wtab = jnp.concatenate([w_eff.reshape(C, 9), b_eff[:, None]], axis=1)
    wtab = jnp.tile(wtab, (N, 1))

    # border-validity masks over the flattened (lane-padded) spatial axis
    idx = jnp.arange(HWP, dtype=jnp.int32)
    row = idx // W
    col = idx - row * W
    masks = jnp.stack(
        [(row != 0), (row != H - 1), (col != 0), (col != W - 1)]
    ).astype(jnp.float32)                                        # (4, HWP)

    # ---- flatten to (N*C, H*W) planes; NCHW kept (reshape is free)
    P = N * C
    CB = _plane_block(P, HWP, jnp.dtype(io_dtype).itemsize)
    P_pad = pl.cdiv(P, CB) * CB

    x_flat = x_nchw.reshape(P, HW).astype(io_dtype)
    if P_pad != P or HWP != HW:
        x_flat = jnp.pad(x_flat, ((0, P_pad - P), (0, HWP - HW)))
    if P_pad != P:
        wtab = jnp.pad(wtab, ((0, P_pad - P), (0, 0)))

    kernel = functools.partial(_repvggdw_kernel, W=W, HWP=HWP)

    out_flat = pl.pallas_call(
        kernel,
        out_shape=jax.ShapeDtypeStruct((P_pad, HWP), x_nchw.dtype),
        grid_spec=pltpu.PrefetchScalarGridSpec(
            num_scalar_prefetch=0,
            grid=(P_pad // CB,),
            in_specs=[
                pl.BlockSpec((CB, HWP), lambda b: (b, 0)),
                pl.BlockSpec((CB, 10), lambda b: (b, 0)),
                pl.BlockSpec((4, HWP), lambda b: (0, 0)),   # fetched once
            ],
            out_specs=pl.BlockSpec((CB, HWP), lambda b: (b, 0)),
        ),
        compiler_params=pltpu.CompilerParams(
            dimension_semantics=("parallel",),
            vmem_limit_bytes=32 * 1024 * 1024,
        ),
    )(x_flat, wtab, masks)

    return out_flat[:P, :HW].reshape(N, C, H, W)


def repvggdw_reference(x, p):
    """Pure-JAX (XLA) reference, identical math, NCHW throughout."""
    C = x.shape[1]
    conv = lax.conv_general_dilated(
        x, p["w3"], window_strides=(1, 1), padding=((1, 1), (1, 1)),
        feature_group_count=C, dimension_numbers=("NCHW", "OIHW", "NCHW"),
        precision=lax.Precision.HIGHEST)

    def bn(v, g, b, m, var):
        return (v - m[None, :, None, None]) / jnp.sqrt(var + EPS)[None, :, None, None] \
            * g[None, :, None, None] + b[None, :, None, None]

    conv = bn(conv, p["bn1_gamma"], p["bn1_beta"], p["bn1_mean"], p["bn1_var"])
    conv1 = x * p["w1"][None, :, None, None] + p["b1"][None, :, None, None]
    y = conv + conv1 + x
    return bn(y, p["bn2_gamma"], p["bn2_beta"], p["bn2_mean"], p["bn2_var"])


def make_params(key, ed):
    ks = jax.random.split(key, 8)
    return {
        # Conv2d_BN: depthwise 3x3 conv (no bias) + BN (weight init 1, bias 0)
        "w3": jax.random.normal(ks[0], (ed, 1, 3, 3), jnp.float32) * 0.2,
        "bn1_gamma": jnp.ones((ed,), jnp.float32),
        "bn1_beta": jnp.zeros((ed,), jnp.float32),
        "bn1_mean": jax.random.normal(ks[1], (ed,), jnp.float32) * 0.1,
        "bn1_var": jnp.abs(jax.random.normal(ks[2], (ed,), jnp.float32)) + 0.5,
        # conv1: depthwise 1x1 conv with bias
        "w1": jax.random.normal(ks[3], (ed,), jnp.float32) * 0.3,
        "b1": jax.random.normal(ks[4], (ed,), jnp.float32) * 0.1,
        # final BN (default torch init: gamma=1, beta=0) with running stats
        "bn2_gamma": jnp.ones((ed,), jnp.float32),
        "bn2_beta": jnp.zeros((ed,), jnp.float32),
        "bn2_mean": jax.random.normal(ks[5], (ed,), jnp.float32) * 0.1,
        "bn2_var": jnp.abs(jax.random.normal(ks[6], (ed,), jnp.float32)) + 0.5,
    }


if __name__ == "__main__":
    key = jax.random.PRNGKey(0)
    kx, kp, kx2, kp2 = jax.random.split(key, 4)

    # Case 1: 16x16 maps (HW already a multiple of 128)
    N, C, H, W = 2, 8, 16, 16
    x = jax.random.normal(kx, (N, C, H, W), jnp.float32)
    params = make_params(kp, C)

    out = jax.block_until_ready(repvggdw_forward(x, params))
    ref = repvggdw_reference(x, params)
    assert out.shape == (N, C, H, W)
    assert jnp.allclose(out, ref, atol=1e-4, rtol=1e-4), "f32 mismatch vs reference"

    # bf16 input stream (f32 accumulate, f32 output); compare against the
    # reference evaluated on the same bf16-rounded input.
    out_bf = jax.block_until_ready(
        repvggdw_forward(x, params, io_dtype=jnp.bfloat16))
    ref_bf = repvggdw_reference(x.astype(jnp.bfloat16).astype(jnp.float32), params)
    assert jnp.allclose(out_bf, ref_bf, atol=2e-3, rtol=2e-3), "bf16-io mismatch"

    # Case 2: 14x14 maps (HW=196 -> lane-padded to 256), exercises the
    # multi-chunk inner loop and the spatial padding / masking path.
    N2, C2, H2, W2 = 2, 24, 14, 14
    x2 = jax.random.normal(kx2, (N2, C2, H2, W2), jnp.float32)
    params2 = make_params(kp2, C2)
    out2 = jax.block_until_ready(repvggdw_forward(x2, params2))
    ref2 = repvggdw_reference(x2, params2)
    assert jnp.allclose(out2, ref2, atol=1e-4, rtol=1e-4), "padded-HW mismatch"

    print("KERNEL_OK")
</pallas_src>

<mosaic_0001>
module attributes {stable_mosaic.version = 11 : i64} {
  func.func @_repvggdw_kernel(%arg0: i32, %arg1: memref<16x256xf32, #tpu.memory_space<vmem>>, %arg2: memref<16x10xf32, #tpu.memory_space<vmem>>, %arg3: memref<4x256xf32, #tpu.memory_space<vmem>>, %arg4: memref<16x256xf32, #tpu.memory_space<vmem>>) attributes {dimension_semantics = [#tpu.dimension_semantics<parallel>], iteration_bounds = array<i64: 1>, scalar_prefetch = 0 : i64, scratch_operands = 0 : i64, tpu.core_type = #tpu.core_type<tc>, window_params = [{transform_indices = @transform_0, window_bounds = array<i64: 16, 256>}, {transform_indices = @transform_1, window_bounds = array<i64: 16, 10>}, {pipeline_mode = #tpu.pipeline_mode<synchronous>, transform_indices = @transform_2, window_bounds = array<i64: 4, 256>}, {transform_indices = @transform_3, window_bounds = array<i64: 16, 256>}]} {
    %c0 = arith.constant 0 : index
    %c0_0 = arith.constant 0 : index
    %0 = vector.load %arg3[%c0, %c0_0] : memref<4x256xf32, #tpu.memory_space<vmem>>, vector<1x256xf32>
    %c1 = arith.constant 1 : index
    %c0_1 = arith.constant 0 : index
    %1 = vector.load %arg3[%c1, %c0_1] : memref<4x256xf32, #tpu.memory_space<vmem>>, vector<1x256xf32>
    %c2 = arith.constant 2 : index
    %c0_2 = arith.constant 0 : index
    %2 = vector.load %arg3[%c2, %c0_2] : memref<4x256xf32, #tpu.memory_space<vmem>>, vector<1x256xf32>
    %c3 = arith.constant 3 : index
    %c0_3 = arith.constant 0 : index
    %3 = vector.load %arg3[%c3, %c0_3] : memref<4x256xf32, #tpu.memory_space<vmem>>, vector<1x256xf32>
    %c0_i32 = arith.constant 0 : i32
    %c16_i32 = arith.constant 16 : i32
    %4 = arith.muli %c0_i32, %c16_i32 : i32
    %5 = tpu.assume_multiple %4, 16 : i32
    %6 = arith.index_cast %5 : i32 to index
    %c0_4 = arith.constant 0 : index
    %7 = vector.load %arg1[%6, %c0_4] : memref<16x256xf32, #tpu.memory_space<vmem>>, vector<16x256xf32>
    %8 = arith.index_cast %5 : i32 to index
    %c0_5 = arith.constant 0 : index
    %9 = vector.load %arg2[%8, %c0_5] : memref<16x10xf32, #tpu.memory_space<vmem>>, vector<16x10xf32>
    %c16_i32_6 = arith.constant 16 : i32
    %10 = tpu.dynamic_rotate %7 by %c16_i32_6 dim 1 : vector<16x256xf32>, i32 -> vector<16x256xf32>
    %11 = vector.broadcast %0 : vector<1x256xf32> to vector<16x256xf32>
    %12 = arith.mulf %10, %11 : vector<16x256xf32>
    %c240_i32 = arith.constant 240 : i32
    %13 = tpu.dynamic_rotate %7 by %c240_i32 dim 1 : vector<16x256xf32>, i32 -> vector<16x256xf32>
    %14 = vector.broadcast %1 : vector<1x256xf32> to vector<16x256xf32>
    %15 = arith.mulf %13, %14 : vector<16x256xf32>
    %16 = vector.extract_strided_slice %9 {offsets = [0, 0], sizes = [16, 1], strides = [1, 1]} : vector<16x10xf32> to vector<16x1xf32>
    %17 = vector.broadcast %16 : vector<16x1xf32> to vector<16x256xf32>
    %18 = arith.mulf %17, %12 : vector<16x256xf32>
    %19 = vector.extract_strided_slice %9 {offsets = [0, 3], sizes = [16, 1], strides = [1, 1]} : vector<16x10xf32> to vector<16x1xf32>
    %20 = vector.broadcast %19 : vector<16x1xf32> to vector<16x256xf32>
    %21 = arith.mulf %20, %7 : vector<16x256xf32>
    %22 = arith.addf %18, %21 : vector<16x256xf32>
    %23 = vector.extract_strided_slice %9 {offsets = [0, 6], sizes = [16, 1], strides = [1, 1]} : vector<16x10xf32> to vector<16x1xf32>
    %24 = vector.broadcast %23 : vector<16x1xf32> to vector<16x256xf32>
    %25 = arith.mulf %24, %15 : vector<16x256xf32>
    %26 = arith.addf %22, %25 : vector<16x256xf32>
    %27 = vector.extract_strided_slice %9 {offsets = [0, 1], sizes = [16, 1], strides = [1, 1]} : vector<16x10xf32> to vector<16x1xf32>
    %28 = vector.broadcast %27 : vector<16x1xf32> to vector<16x256xf32>
    %29 = arith.mulf %28, %12 : vector<16x256xf32>
    %30 = vector.extract_strided_slice %9 {offsets = [0, 4], sizes = [16, 1], strides = [1, 1]} : vector<16x10xf32> to vector<16x1xf32>
    %31 = vector.broadcast %30 : vector<16x1xf32> to vector<16x256xf32>
    %32 = arith.mulf %31, %7 : vector<16x256xf32>
    %33 = arith.addf %29, %32 : vector<16x256xf32>
    %34 = vector.extract_strided_slice %9 {offsets = [0, 7], sizes = [16, 1], strides = [1, 1]} : vector<16x10xf32> to vector<16x1xf32>
    %35 = vector.broadcast %34 : vector<16x1xf32> to vector<16x256xf32>
    %36 = arith.mulf %35, %15 : vector<16x256xf32>
    %37 = arith.addf %33, %36 : vector<16x256xf32>
    %38 = vector.extract_strided_slice %9 {offsets = [0, 2], sizes = [16, 1], strides = [1, 1]} : vector<16x10xf32> to vector<16x1xf32>
    %39 = vector.broadcast %38 : vector<16x1xf32> to vector<16x256xf32>
    %40 = arith.mulf %39, %12 : vector<16x256xf32>
    %41 = vector.extract_strided_slice %9 {offsets = [0, 5], sizes = [16, 1], strides = [1, 1]} : vector<16x10xf32> to vector<16x1xf32>
    %42 = vector.broadcast %41 : vector<16x1xf32> to vector<16x256xf32>
    %43 = arith.mulf %42, %7 : vector<16x256xf32>
    %44 = arith.addf %40, %43 : vector<16x256xf32>
    %45 = vector.extract_strided_slice %9 {offsets = [0, 8], sizes = [16, 1], strides = [1, 1]} : vector<16x10xf32> to vector<16x1xf32>
    %46 = vector.broadcast %45 : vector<16x1xf32> to vector<16x256xf32>
    %47 = arith.mulf %46, %15 : vector<16x256xf32>
    %48 = arith.addf %44, %47 : vector<16x256xf32>
    %49 = vector.extract_strided_slice %9 {offsets = [0, 9], sizes = [16, 1], strides = [1, 1]} : vector<16x10xf32> to vector<16x1xf32>
    %50 = vector.broadcast %49 : vector<16x1xf32> to vector<16x256xf32>
    %51 = arith.addf %37, %50 : vector<16x256xf32>
    %c1_i32 = arith.constant 1 : i32
    %52 = tpu.dynamic_rotate %26 by %c1_i32 dim 1 : vector<16x256xf32>, i32 -> vector<16x256xf32>
    %53 = vector.broadcast %2 : vector<1x256xf32> to vector<16x256xf32>
    %54 = arith.mulf %53, %52 : vector<16x256xf32>
    %55 = arith.addf %51, %54 : vector<16x256xf32>
    %c255_i32 = arith.constant 255 : i32
    %56 = tpu.dynamic_rotate %48 by %c255_i32 dim 1 : vector<16x256xf32>, i32 -> vector<16x256xf32>
    %57 = vector.broadcast %3 : vector<1x256xf32> to vector<16x256xf32>
    %58 = arith.mulf %57, %56 : vector<16x256xf32>
    %59 = arith.addf %55, %58 : vector<16x256xf32>
    %60 = arith.index_cast %5 : i32 to index
    %c0_7 = arith.constant 0 : index
    %61 = vector.load %arg4[%60, %c0_7] : memref<16x256xf32, #tpu.memory_space<vmem>>, vector<16x256xf32>
    tpu.vector_store %arg4[%60, %c0_7], %59 {strides = array<i32>} : memref<16x256xf32, #tpu.memory_space<vmem>>, vector<16x256xf32>,
    %c1_i32_8 = arith.constant 1 : i32
    return
  }
  func.func @transform_0(%arg0: i32) -> (i32, i32) {
    %c0_i32 = arith.constant 0 : i32
    %c0_i32_0 = arith.constant 0 : i32
    return %arg0, %c0_i32 : i32, i32
  }
  func.func @transform_1(%arg0: i32) -> (i32, i32) {
    %c0_i32 = arith.constant 0 : i32
    %c0_i32_0 = arith.constant 0 : i32
    return %arg0, %c0_i32 : i32, i32
  }
  func.func @transform_2(%arg0: i32) -> (i32, i32) {
    %c0_i32 = arith.constant 0 : i32
    %c0_i32_0 = arith.constant 0 : i32
    %c0_i32_1 = arith.constant 0 : i32
    return %c0_i32, %c0_i32_0 : i32, i32
  }
  func.func @transform_3(%arg0: i32) -> (i32, i32) {
    %c0_i32 = arith.constant 0 : i32
    %c0_i32_0 = arith.constant 0 : i32
    return %arg0, %c0_i32 : i32, i32
  }
}

</mosaic_0001>

<bundles_post_ra>
// kernel: tpu_custom_call.1
= control target key start
LH: loop header
LB: loop body
LE: loop exit
PB: predicated region body
PF: predicated region fallthrough
CT: control target
= control target key end

     0   :  { %8 = vsyncpa [#allocation3], 0  ;;  %s705_s0 = inlined_call_operand.hbm [shape: f32[16,256], index: 0, kind: input, shape index: {}]   ;;  %s706_s1 = inlined_call_operand.hbm [shape: f32[16,10], index: 1, kind: input, shape index: {}]   ;;  %s707_s2 = inlined_call_operand.hbm [shape: f32[4,256], index: 2, kind: input, shape index: {}]   ;;  %s708_s3 = inlined_call_operand.hbm [shape: f32[16,256], index: 3, kind: output, shape index: {}]  }
   0x1   :  { %9 = vsyncpa [#allocation6], 0 }
   0x2   :  { %10 = vsyncpa [#allocation4], 0  ;;  %s493_s12 = smov [#allocation5]   ;;  %s399_s16 = scalar_lea.hbm %s706_s1, 256 }
   0x3   :  { %s28_s13 = sshll.u32 %s493_s12, 4  ;;  %p400_p0 = scmp.ne.s32.totalorder %s706_s1, %s399_s16  ;;  %s29_s13 = int_to_ptr.vmem [resolvable:$true] %s28_s13 }
   0x4   :  { %p403_p1 = scmp.lt.u32.totalorder %s399_s16, %s706_s1 }
   0x6   :  { %p405_p2 = pnand %p403_p1, %p400_p0 }
   0x8   :  { %408 = shalt.err (!%p405_p2)
}
   0x9   :  { %s409_s21 = scalar_lea.vmem %s29_s13, 256  ;;  %p414_p4 = scmp.lt.s32.totalorder %s29_s13, %s29_s13 }
   0xa   :  { %p410_p3 = scmp.ne.s32.totalorder %s29_s13, %s409_s21  ;;  %p415_p5 = scmp.lt.s32.totalorder %s409_s21, %s409_s21 }
   0xc   :  { %p416_p6 = por %p415_p5, %p414_p4 }
   0xe   :  { %p417_p7 = pnand %p416_p6, %p410_p3 }
  0x10   :  { %420 = shalt.err (!%p417_p7)
}
  0x11   :  { %s494_s22 = smov 128   ;;  %s495_s23 = smov 8  }
  0x12   :  { %34 = dma.hbm_to_vmem [thread:$0]  %s706_s1, 256, %s29_s13, [#allocation6], %s494_s22, %s494_s22, %s495_s23  }
  0x13   :  { %s496_s26 = smov [#allocation2]   ;;  %s421_s30 = scalar_lea.hbm %s705_s0, 512 }
  0x14   :  { %s16_s27 = sshll.u32 %s496_s26, 4  ;;  %p422_p8 = scmp.ne.s32.totalorder %s705_s0, %s421_s30  ;;  %s17_s27 = int_to_ptr.vmem [resolvable:$true] %s16_s27 }
  0x15   :  { %p425_p9 = scmp.lt.u32.totalorder %s421_s30, %s705_s0 }
  0x17   :  { %p427_p10 = pnand %p425_p9, %p422_p8 }
  0x19   :  { %430 = shalt.err (!%p427_p10)
}
  0x1a   :  { %s431_s8 = scalar_lea.vmem %s17_s27, 512  ;;  %p436_p12 = scmp.lt.s32.totalorder %s17_s27, %s17_s27 }
  0x1b   :  { %p432_p11 = scmp.ne.s32.totalorder %s17_s27, %s431_s8  ;;  %p437_p13 = scmp.lt.s32.totalorder %s431_s8, %s431_s8 }
  0x1d   :  { %p438_p0 = por %p437_p13, %p436_p12 }
  0x1f   :  { %p439_p1 = pnand %p438_p0, %p432_p11 }
  0x21   :  { %442 = shalt.err (!%p439_p1)
}
  0x22   :  { %s497_s1 = smov 256   ;;  %s498_s9 = smov 16  }
  0x23   :  { %22 = dma.hbm_to_vmem [thread:$0]  %s705_s0, 512, %s17_s27, [#allocation3], %s497_s1, %s497_s1, %s498_s9  }
  0x24   :  { %s499_s12 = smov [#allocation7]   ;;  %s443_s16 = scalar_lea.hbm %s707_s2, 128 }
  0x25   :  { %s41_s13 = sshll.u32 %s499_s12, 4  ;;  %p444_p2 = scmp.ne.s32.totalorder %s707_s2, %s443_s16  ;;  %s42_s13 = int_to_ptr.vmem [resolvable:$true] %s41_s13 }
  0x26   :  { %p447_p3 = scmp.lt.u32.totalorder %s443_s16, %s707_s2 }
  0x28   :  { %p449_p4 = pnand %p447_p3, %p444_p2 }
  0x2a   :  { %452 = shalt.err (!%p449_p4)
}
  0x2b   :  { %s453_s21 = scalar_lea.vmem %s42_s13, 128  ;;  %p458_p6 = scmp.lt.s32.totalorder %s42_s13, %s42_s13 }
  0x2c   :  { %p454_p5 = scmp.ne.s32.totalorder %s42_s13, %s453_s21  ;;  %p459_p7 = scmp.lt.s32.totalorder %s453_s21, %s453_s21 }
  0x2e   :  { %p460_p8 = por %p459_p7, %p458_p6 }
  0x30   :  { %p461_p9 = pnand %p460_p8, %p454_p5 }
  0x32   :  { %464 = shalt.err (!%p461_p9)
}
  0x33   :  { %44 = dma.hbm_to_vmem [thread:$0]  %s707_s2, 128, %s42_s13, [#allocation6]  }
  0x34   :  { %487 = dma.done.wait [#allocation3], 512  }
  0x35   :  { %488 = vsyncadd [#allocation3], 4294966784 }
  0x36   :  { %489 = dma.done.wait [#allocation6], 384  }
  0x37   :  { %490 = vsyncadd [#allocation6], 4294966912  ;;  %v500_v0 = vmov 3   ;;  %v501_v1 = vmov 0   ;;  %v68_v2 = vld [vmem:[#allocation5] sm:$0xff]  ;;  %v69_v3 = vld [vmem:[#allocation5 + $0x8] sm:$0xff]  ;;  %v78_v26 = vlaneseq }
  0x38   :  { %384 = vset.pattern.permute.xlu1 %v500_v0  ;;  %383 = vset.pattern.permute.xlu0 %v501_v1  ;;  %v502_v4 = vmov 6   ;;  %v503_v5 = vmov 2   ;;  %v573_v6 = vld [vmem:[#allocation2] sm:$0xff]  ;;  %v504_v7 = vmov 5   ;;  %v577_v8 = vld [vmem:[#allocation2 + $0x8] sm:$0xff]  ;;  %v505_v9 = vmov 8  }
  0x39   :  { %143 = vperm.xlu1 %384, %v68_v2   ;;  %130 = vperm.xlu0 %383, %v68_v2   ;;  %v581_v10 = vld [vmem:[#allocation2 + $0x10] sm:$0xff]  ;;  %v585_v11 = vld [vmem:[#allocation2 + $0x18] sm:$0xff]  ;;  %s506_s2 = smov 112   ;;  %v507_v12 = vmov 1   ;;  %v508_v13 = vmov 7   ;;  %v509_v14 = vmov 9  }
  0x3a   :  { %v510_v15 = vmov 4   ;;  %v87_v29 = vshrl.u32 %v78_v26, 7  ;;  %v603_v32 = vand.u32 127, %v78_v26  ;;  %v54_v35 = vld [vmem:[#allocation7] ss:$4 sm:$0x3] }
  0x3b   :  { %v56_v44 = vld [vmem:[#allocation7 + $0x1] ss:$4 sm:$0x3]  ;;  %s511_s23 = smov 1   ;;  %s512_s24 = smov 127  }
  0x3c   :  { %v605_v33 = vsub.s32 1, %v87_v29  ;;  %v607_v34 = vsub.s32 0, %v87_v29  ;;  %vm80_vm0 = vcmp.lt.s32.totalorder %v603_v32, 16  ;;  %vm108_vm1 = vcmp.lt.s32.totalorder %v603_v32, 112  ;;  %s513_s25 = smov [#allocation8]  }
  0x3d   :  { %147 = vperm.xlu1 %384, %v69_v3   ;;  %135 = vperm.xlu0 %383, %v69_v3   ;;  %vm282_vm2 = vcmp.lt.s32.totalorder %v603_v32, 1  ;;  %vm314_vm3 = vcmp.lt.s32.totalorder %v603_v32, 127  ;;  %s349_s26 = sshll.u32 %s513_s25, 4  ;;  %s350_s26 = int_to_ptr.vmem [resolvable:$true] %s349_s26 }
  0x3e   :  { %v93_v38 = vrot.slane %v54_v35, %v605_v33  ;;  %v89_v40 = vrot.slane %v54_v35, %v607_v34  ;;  %v117_v51 = vrot.slane %v56_v44, %v607_v34  ;;  %v121_v57 = vrot.slane %v56_v44, %v605_v33  ;;  %s465_s27 = scalar_lea.vmem %s350_s26, 512  ;;  %p470_p11 = scmp.lt.s32.totalorder %s350_s26, %s350_s26 }
  0x3f   :  { %p466_p10 = scmp.ne.s32.totalorder %s350_s26, %s465_s27  ;;  %p471_p12 = scmp.lt.s32.totalorder %s465_s27, %s465_s27 }
  0x41   :  { %386 = vset.pattern.permute.xlu1 %v502_v4  ;;  %385 = vset.pattern.permute.xlu0 %v502_v4  ;;  %p472_p13 = por %p471_p12, %p470_p11 }
  0x42   :  { %163 = vperm.xlu1 %386, %v69_v3   ;;  %159 = vperm.xlu0 %385, %v68_v2  }
  0x43   :  { %p473_p0 = pnand %p472_p13, %p466_p10 }
  0x46   :  { %387 = vset.pattern.permute.xlu1 %v503_v5  ;;  %388 = vset.pattern.permute.xlu0 %v503_v5 }
  0x47   :  { %219 = vperm.xlu1 %387, %v68_v2   ;;  %223 = vperm.xlu0 %388, %v69_v3  }
  0x4b   :  { %389 = vset.pattern.permute.xlu1 %v504_v7  ;;  %70 = vrot.lane.b32.xlu0 %v573_v6, %s498_s9 }
  0x4c   :  { %231 = vperm.xlu1 %389, %v68_v2   ;;  %390 = vset.pattern.permute.xlu0 %v505_v9 }
  0x4f   :  { %74 = vrot.lane.b32.xlu0 %v577_v8, %s498_s9 }
  0x50   :  { %235 = vperm.xlu1 %389, %v69_v3  }
  0x53   :  { %247 = vperm.xlu0 %390, %v68_v2  }
  0x54   :  { %72 = vrot.lane.b32.xlu1 %v581_v10, %s498_s9 }
  0x55   :  { %391 = vset.pattern.permute.xlu1 %v505_v9 }
  0x57   :  { %102 = vrot.lane.b32.xlu0 %v581_v10, %s506_s2 }
  0x58   :  { %76 = vrot.lane.b32.xlu1 %v585_v11, %s498_s9  ;;  %393 = vset.pattern.permute.xlu0 %v507_v12 }
  0x5b   :  { %106 = vrot.lane.b32.xlu0 %v585_v11, %s506_s2 }
  0x5c   :  { %251 = vperm.xlu1 %391, %v69_v3  }
  0x5f   :  { %179 = vperm.xlu0 %393, %v69_v3  }
  0x60   :  { %100 = vrot.lane.b32.xlu1 %v573_v6, %s506_s2 }
  0x61   :  { %392 = vset.pattern.permute.xlu1 %v507_v12 }
  0x63   :  { %395 = vset.pattern.permute.xlu0 %v508_v13 }
  0x64   :  { %104 = vrot.lane.b32.xlu1 %v577_v8, %s506_s2  ;;  %203 = vperm.xlu0 %395, %v68_v2  }
  0x68   :  { %175 = vperm.xlu1 %392, %v68_v2   ;;  %398 = vset.pattern.permute.xlu0 %v509_v14 }
  0x69   :  { %267 = vperm.xlu0 %398, %v69_v3  }
  0x6c   :  { %394 = vset.pattern.permute.xlu1 %v510_v15 }
  0x6d   :  { %187 = vperm.xlu1 %394, %v68_v2  }
  0x71   :  { %191 = vperm.xlu1 %394, %v69_v3  }
  0x75   :  { %396 = vset.pattern.permute.xlu1 %v508_v13 }
  0x76   :  { %207 = vperm.xlu1 %396, %v69_v3  }
  0x7a   :  { %397 = vset.pattern.permute.xlu1 %v509_v14 }
  0x7b   :  { %263 = vperm.xlu1 %397, %v68_v2  }
  0xb8   :  { %v144_v16 = vpop.permute.xlu1 %143  ;;  %v131_v17 = vpop.permute.xlu0 %130 }
  0xb9   :  { %v151_v54 = vmul.f32 %v144_v16, %v577_v8  ;;  %v150_v63 = vmul.f32 %v144_v16, %v573_v6 }
  0xbc   :  { %v148_v18 = vpop.permute.xlu1 %147  ;;  %v136_v19 = vpop.permute.xlu0 %135 }
  0xbd   :  { %v152_v3 = vmul.f32 %v148_v18, %v581_v10 }
  0xc1   :  { %v593_v20 = vpop.permute.xlu1 %163  ;;  %v160_v21 = vpop.permute.xlu0 %159 }
  0xc6   :  { %v595_v22 = vpop.permute.xlu1 %219  ;;  %v597_v23 = vpop.permute.xlu0 %223 }
  0xca   :  { %v71_v24 = vpop.permute.xlu0 %70 }
  0xcb   :  { %v232_v25 = vpop.permute.xlu1 %231 }
  0xce   :  { %v75_v27 = vpop.permute.xlu0 %74 }
  0xcf   :  { %v599_v28 = vpop.permute.xlu1 %235  ;;  %v81_v39 = vsel %vm80_vm0, %v71_v24, %v75_v27  ;;  %v83_v42 = vsel %vm80_vm0, %v75_v27, %v71_v24  ;;  %v238_v27 = vmul.f32 %v232_v25, %v573_v6 }
  0xd0   :  { %v97_v45 = vmul.f32 %v93_v38, %v81_v39  ;;  %v96_v47 = vmul.f32 %v89_v40, %v83_v42 }
  0xd2   :  { %v601_v30 = vpop.permute.xlu0 %247  ;;  %v139_v53 = vmul.f32 %v131_v17, %v97_v45  ;;  %v138_v55 = vmul.f32 %v131_v17, %v96_v47  ;;  %v226_v4 = vmul.f32 %v595_v22, %v96_v47  ;;  %v153_v17 = vmul.f32 %v148_v18, %v585_v11 }
  0xd3   :  { %v73_v31 = vpop.permute.xlu1 %72 }
  0xd4   :  { %v155_v5 = vadd.f32 %v151_v54, %v139_v53  ;;  %v154_v14 = vadd.f32 %v150_v63, %v138_v55  ;;  %v242_v18 = vadd.f32 %v238_v27, %v226_v4 }
  0xd6   :  { %v103_v37 = vpop.permute.xlu0 %102 }
  0xd7   :  { %v77_v36 = vpop.permute.xlu1 %76 }
  0xd8   :  { %v84_v43 = vsel %vm80_vm0, %v77_v36, %v73_v31  ;;  %v82_v49 = vsel %vm80_vm0, %v73_v31, %v77_v36  ;;  %v227_v36 = vmul.f32 %v595_v22, %v97_v45 }
  0xd9   :  { %v615_v50 = vmul.f32 %v89_v40, %v84_v43  ;;  %v621_v56 = vmul.f32 %v93_v38, %v82_v49  ;;  %v240_v49 = vmul.f32 %v599_v28, %v581_v10 }
  0xda   :  { %v107_v46 = vpop.permute.xlu0 %106 }
  0xdb   :  { %v612_v41 = vpop.permute.xlu1 %251  ;;  %v110_v52 = vsel %vm108_vm1, %v103_v37, %v107_v46  ;;  %v140_v59 = vmul.f32 %v136_v19, %v615_v50  ;;  %v112_v0 = vsel %vm108_vm1, %v107_v46, %v103_v37  ;;  %v141_v7 = vmul.f32 %v136_v19, %v621_v56 }
  0xdc   :  { %v625_v60 = vmul.f32 %v117_v51, %v110_v52  ;;  %v127_v16 = vmul.f32 %v121_v57, %v112_v0  ;;  %v239_v19 = vmul.f32 %v232_v25, %v577_v8 }
  0xdd   :  { %v156_v24 = vadd.f32 %v152_v3, %v140_v59  ;;  %v157_v38 = vadd.f32 %v153_v17, %v141_v7 }
  0xde   :  { %v180_v9 = vpop.permute.xlu0 %179  ;;  %v168_v26 = vmul.f32 %v593_v20, %v625_v60  ;;  %v169_v44 = vmul.f32 %v593_v20, %v127_v16  ;;  %v243_v52 = vadd.f32 %v239_v19, %v227_v36 }
  0xdf   :  { %v101_v48 = vpop.permute.xlu1 %100  ;;  %v185_v63 = vmul.f32 %v180_v9, %v621_v56 }
  0xe0   :  { %v172_v43 = vadd.f32 %v168_v26, %v156_v24  ;;  %v173_v55 = vadd.f32 %v169_v44, %v157_v38 }
  0xe3   :  { %v105_v58 = vpop.permute.xlu1 %104  ;;  %v204_v37 = vpop.permute.xlu0 %203 }
  0xe4   :  { %v109_v61 = vsel %vm108_vm1, %v101_v48, %v105_v58  ;;  %v111_v62 = vsel %vm108_vm1, %v105_v58, %v101_v48 }
  0xe5   :  { %v124_v1 = vmul.f32 %v117_v51, %v109_v61  ;;  %v125_v2 = vmul.f32 %v121_v57, %v111_v62  ;;  %v241_v62 = vmul.f32 %v599_v28, %v585_v11 }
  0xe7   :  { %v176_v12 = vpop.permute.xlu1 %175  ;;  %v167_v13 = vmul.f32 %v160_v21, %v125_v2  ;;  %v166_v15 = vmul.f32 %v160_v21, %v124_v1  ;;  %v254_v35 = vmul.f32 %v601_v30, %v124_v1  ;;  %v228_v21 = vmul.f32 %v597_v23, %v615_v50 }
  0xe8   :  { %v182_v39 = vmul.f32 %v176_v12, %v96_v47  ;;  %v183_v40 = vmul.f32 %v176_v12, %v97_v45  ;;  %v255_v48 = vmul.f32 %v601_v30, %v125_v2  ;;  %v210_v51 = vmul.f32 %v204_v37, %v124_v1 }
  0xe9   :  { %v171_v29 = vadd.f32 %v167_v13, %v155_v5  ;;  %v170_v31 = vadd.f32 %v166_v15, %v154_v14  ;;  %v258_v46 = vadd.f32 %v254_v35, %v242_v18  ;;  %v211_v53 = vmul.f32 %v204_v37, %v125_v2  ;;  %v268_v13 = vpop.permute.xlu0 %267 }
  0xea   :  { %v244_v20 = vadd.f32 %v240_v49, %v228_v21  ;;  %v259_v45 = vadd.f32 %v255_v48, %v243_v52  ;;  %v257_v1 = vmul.f32 %v612_v41, %v127_v16 }
  0xeb   :  { %278 = vrot.lane.b32.xlu0 %v171_v29, %s511_s23  ;;  %274 = vrot.lane.b32.xlu1 %v170_v31, %s511_s23 }
  0xec   :  { %v188_v42 = vpop.permute.xlu1 %187 }
  0xed   :  { %v194_v25 = vmul.f32 %v188_v42, %v573_v6  ;;  %v195_v22 = vmul.f32 %v188_v42, %v577_v8  ;;  %v229_v6 = vmul.f32 %v597_v23, %v621_v56  ;;  %v256_v8 = vmul.f32 %v612_v41, %v625_v60 }
  0xee   :  { %v184_v23 = vmul.f32 %v180_v9, %v615_v50  ;;  %v58_v50 = vld [vmem:[#allocation7 + $0x2] ss:$4 sm:$0x3] }
  0xef   :  { %v198_v54 = vadd.f32 %v194_v25, %v182_v39  ;;  %v199_v47 = vadd.f32 %v195_v22, %v183_v40  ;;  %306 = vrot.lane.b32.xlu0 %v258_v46, %s512_s24  ;;  %276 = vrot.lane.b32.xlu1 %v172_v43, %s511_s23  ;;  %v245_v0 = vadd.f32 %v241_v62, %v229_v6 }
  0xf0   :  { %v192_v30 = vpop.permute.xlu1 %191  ;;  %v260_v2 = vadd.f32 %v256_v8, %v244_v20  ;;  %v291_v41 = vrot.slane %v58_v50, %v607_v34  ;;  %v295_v9 = vrot.slane %v58_v50, %v605_v33 }
  0xf1   :  { %v214_v57 = vadd.f32 %v210_v51, %v198_v54  ;;  %v215_v58 = vadd.f32 %v211_v53, %v199_v47  ;;  %v196_v59 = vmul.f32 %v192_v30, %v581_v10  ;;  %v197_v61 = vmul.f32 %v192_v30, %v585_v11 }
  0xf2   :  { %v261_v28 = vadd.f32 %v257_v1, %v245_v0 }
  0xf3   :  { %310 = vrot.lane.b32.xlu0 %v259_v45, %s512_s24  ;;  %280 = vrot.lane.b32.xlu1 %v173_v55, %s511_s23  ;;  %v200_v4 = vadd.f32 %v196_v59, %v184_v23  ;;  %v201_v5 = vadd.f32 %v197_v61, %v185_v63 }
  0xf5   :  { %v208_v3 = vpop.permute.xlu1 %207 }
  0xf6   :  { %v212_v10 = vmul.f32 %v208_v3, %v625_v60  ;;  %v213_v7 = vmul.f32 %v208_v3, %v127_v16  ;;  %v60_v16 = vld [vmem:[#allocation7 + $0x3] ss:$4 sm:$0x3] }
  0xf7   :  { %308 = vrot.lane.b32.xlu1 %v260_v2, %s512_s24  ;;  %v323_v31 = vrot.slane %v60_v16, %v607_v34  ;;  %v327_v35 = vrot.slane %v60_v16, %v605_v33 }
  0xf8   :  { %v216_v12 = vadd.f32 %v212_v10, %v200_v4  ;;  %v217_v11 = vadd.f32 %v213_v7, %v201_v5 }
  0xfa   :  { %v264_v14 = vpop.permute.xlu1 %263  ;;  %v272_v49 = vadd.f32 %v268_v13, %v216_v12  ;;  %v273_v51 = vadd.f32 %v268_v13, %v217_v11 }
  0xfb   :  { %312 = vrot.lane.b32.xlu1 %v261_v28, %s512_s24  ;;  %v270_v19 = vadd.f32 %v264_v14, %v214_v57  ;;  %v271_v36 = vadd.f32 %v264_v14, %v215_v58 }
 0x15d   :  { %v279_v15 = vpop.permute.xlu0 %278  ;;  %v275_v56 = vpop.permute.xlu1 %274 }
 0x15e   :  { %v283_v60 = vsel %vm282_vm2, %v275_v56, %v279_v15  ;;  %v285_v17 = vsel %vm282_vm2, %v279_v15, %v275_v56 }
 0x15f   :  { %v298_v27 = vmul.f32 %v291_v41, %v285_v17  ;;  %v299_v29 = vmul.f32 %v295_v9, %v283_v60 }
 0x161   :  { %v307_v24 = vpop.permute.xlu0 %306  ;;  %v277_v26 = vpop.permute.xlu1 %276  ;;  %v302_v39 = vadd.f32 %v298_v27, %v270_v19  ;;  %v303_v40 = vadd.f32 %v299_v29, %v271_v36 }
 0x165   :  { %v311_v21 = vpop.permute.xlu0 %310  ;;  %v281_v37 = vpop.permute.xlu1 %280 }
 0x166   :  { %v315_v18 = vsel %vm314_vm3, %v307_v24, %v311_v21  ;;  %v317_v38 = vsel %vm314_vm3, %v311_v21, %v307_v24  ;;  %v284_v44 = vsel %vm282_vm2, %v277_v26, %v281_v37  ;;  %v286_v33 = vsel %vm282_vm2, %v281_v37, %v277_v26 }
 0x167   :  { %v330_v42 = vmul.f32 %v323_v31, %v315_v18  ;;  %v331_v43 = vmul.f32 %v327_v35, %v317_v38  ;;  %v300_v46 = vmul.f32 %v291_v41, %v286_v33  ;;  %v301_v48 = vmul.f32 %v295_v9, %v284_v44 }
 0x169   :  { %v334_v34 = vadd.f32 %v330_v42, %v302_v39  ;;  %v335_v25 = vadd.f32 %v331_v43, %v303_v40  ;;  %v309_v22 = vpop.permute.xlu1 %308  ;;  %v304_v47 = vadd.f32 %v300_v46, %v272_v49  ;;  %v305_v6 = vadd.f32 %v301_v48, %v273_v51 }
 0x16b   :  { %340 = vst [vmem:[#allocation8] sm:$0xff] %v334_v34  ;;  %341 = vst [vmem:[#allocation8 + $0x8] sm:$0xff] %v335_v25 }
 0x16d   :  { %v313_v52 = vpop.permute.xlu1 %312 }
 0x16e   :  { %v316_v53 = vsel %vm314_vm3, %v309_v22, %v313_v52  ;;  %v318_v54 = vsel %vm314_vm3, %v313_v52, %v309_v22 }
 0x16f   :  { %v332_v20 = vmul.f32 %v323_v31, %v316_v53  ;;  %v333_v8 = vmul.f32 %v327_v35, %v318_v54 }
 0x171   :  { %v336_v30 = vadd.f32 %v332_v20, %v304_v47  ;;  %v337_v45 = vadd.f32 %v333_v8, %v305_v6 }
 0x173   :  { %342 = vst [vmem:[#allocation8 + $0x10] sm:$0xff] %v336_v30  ;;  %343 = vst [vmem:[#allocation8 + $0x18] sm:$0xff] %v337_v45 }
 0x174   :  { %476 = shalt.err (!%p473_p0)
}
 0x175   :  { %s477_s30 = scalar_lea.hbm %s708_s3, 512 }
 0x176   :  { %p478_p1 = scmp.ne.s32.totalorder %s708_s3, %s477_s30  ;;  %p481_p2 = scmp.lt.u32.totalorder %s477_s30, %s708_s3 }
 0x178   :  { %p483_p3 = pnand %p481_p2, %p478_p1 }
 0x17a   :  { %486 = shalt.err (!%p483_p3)
}
 0x17b   :  { %355 = dma.vmem_to_hbm [thread:$0]  %s350_s26, 512, %s708_s3, [#allocation4], %s497_s1, %s497_s1, %s498_s9  }
 0x17c   :  { %491 = dma.done.wait [#allocation4], 512  }
 0x17d   :  { %492 = vsyncadd [#allocation4], 4294966784 }
 0x17e   :  { %359 = vsyncpa [#allocation3], 1 }
 0x17f   :  { %360 = vsyncpa [#allocation6], 1 }
 0x180   :  { %361 = vsyncpa [#allocation4], 1 }

</bundles_post_ra>
